<compile_context>
chip_gen: v7x
topology: tpu7x:2x2x1
jax: 0.10.0
libtpu: 0.0.40
codegen_flags: <defaults>
</compile_context>

<pallas_src>
import functools

import jax
import jax.numpy as jnp
from jax import lax
from jax.experimental import pallas as pl
from jax.experimental.pallas import tpu as pltpu


def _mha1d_kernel(x_ref, y_ref, wqk_ref, bqk_ref, wvp_ref, bvp_ref, gamma_ref,
                  out_ref, *, n_seq, batch_block, cq, cv, use_bf16):
    """One grid step == `batch_block` batch elements folded into lanes."""
    x = x_ref[0]            # (Cx, TB*N)
    y = y_ref[0]            # (Cy, TB*N)

    # Fused 1x1-conv projections: one MXU push for Q|K against x and one for
    # V|proj against y (instead of four small matmuls).
    qk = jnp.dot(wqk_ref[...], x, preferred_element_type=jnp.float32) + bqk_ref[...]  # (2Cq, TB*N)
    vp = jnp.dot(wvp_ref[...], y, preferred_element_type=jnp.float32) + bvp_ref[...]  # (2Cv, TB*N)

    q = qk[:cq, :]          # (Cq, TB*N)   (sublane-aligned static slices)
    k = qk[cq:, :]
    v = vp[:cv, :]          # (Cv, TB*N)
    y_proj = vp[cv:, :]     # (Cv, TB*N)

    mm_dtype = jnp.bfloat16 if use_bf16 else jnp.float32

    outs = []
    for b in range(batch_block):                      # static unroll, TB small
        lo, hi = b * n_seq, (b + 1) * n_seq
        q_b = q[:, lo:hi].astype(mm_dtype)            # (Cq, N)
        k_b = k[:, lo:hi].astype(mm_dtype)            # (Cq, N)
        v_b = v[:, lo:hi]                             # (Cv, N)

        # energy = Q^T K: contract the channel axis of both operands (no
        # materialized transpose).
        energy = lax.dot_general(q_b, k_b, (((0,), (0,)), ((), ())),
                                 preferred_element_type=jnp.float32)   # (N, N)
        energy = energy - jnp.max(energy, axis=-1, keepdims=True)
        p = jnp.exp(energy)
        inv = pl.reciprocal(jnp.sum(p, axis=-1, keepdims=True), approx=False)
        attn = p * inv                                                 # (N, N)

        # out = V @ attn^T: contract the key axis of both operands.
        out_b = lax.dot_general(v_b.astype(mm_dtype), attn.astype(mm_dtype),
                                (((1,), (1,)), ((), ())),
                                preferred_element_type=jnp.float32)    # (Cv, N)
        outs.append(out_b)

    attn_out = outs[0] if batch_block == 1 else jnp.concatenate(outs, axis=-1)  # (Cv, TB*N)

    # Residual blend (g*out + proj)/(1+g) == a*out + b*proj with scalars from SMEM.
    g = gamma_ref[0, 0]
    b_coef = 1.0 / (1.0 + g)
    a_coef = g * b_coef
    out_ref[0] = (a_coef * attn_out + b_coef * y_proj).astype(out_ref.dtype)


def _pick_batch_block(batch):
    """Largest divisor of `batch` (capped at 8) that still leaves >=2 grid
    steps when batch >= 2, so both v7x TensorCores get work."""
    cap = min(8, max(1, batch // 2))
    for tb in range(cap, 0, -1):
        if batch % tb == 0:
            return tb
    return 1


def multi_head_attention_1d(x, y, params, *, batch_block=None,
                            interpolation_mode="nearest", use_bf16=False):
    """x: (B, Cx, n) f32, y: (B, Cy, N) f32  ->  (B, Cv, N) f32."""
    B, Cx, n = x.shape
    B2, Cy, N = y.shape
    assert B == B2

    # Glue: torch.nn.functional.interpolate(x, N, mode='nearest') if n != N.
    if n != N:
        assert interpolation_mode == "nearest"
        idx = (jnp.arange(N) * n // N).astype(jnp.int32)
        x = x[:, :, idx]

    wq, bq = params["wq"], params["bq"]          # (Cq, Cx), (Cq, 1)
    wk, bk = params["wk"], params["bk"]          # (Cq, Cx), (Cq, 1)
    wv, bv = params["wv"], params["bv"]          # (Cv, Cy), (Cv, 1)
    wp = params["wp"]                            # (Cv, Cy), bias-free
    gamma = params["gamma"].reshape(1, 1).astype(jnp.float32)
    Cq = wq.shape[0]
    Cv = wv.shape[0]

    # Fused projection weights (wrapper-side concat is cheap / one-time).
    wqk = jnp.concatenate([wq, wk], axis=0)                    # (2Cq, Cx)
    bqk = jnp.concatenate([bq, bk], axis=0)                    # (2Cq, 1)
    wvp = jnp.concatenate([wv, wp], axis=0)                    # (2Cv, Cy)
    bvp = jnp.concatenate([bv, jnp.zeros_like(bv)], axis=0)    # (2Cv, 1)

    if batch_block is None:
        batch_block = _pick_batch_block(B)
    assert B % batch_block == 0
    G = B // batch_block
    TBN = batch_block * N   # lane width of each slab; ideally a multiple of 128

    # Fold batch_block batch elements into the lane axis: (G, C, TB*N) slabs.
    def fold(a):
        c = a.shape[1]
        return a.reshape(G, batch_block, c, N).transpose(0, 2, 1, 3).reshape(G, c, TBN)

    x_slab = fold(x)
    y_slab = fold(y)

    kernel = functools.partial(
        _mha1d_kernel, n_seq=N, batch_block=batch_block, cq=Cq, cv=Cv,
        use_bf16=use_bf16)

    full2d = lambda a: pl.BlockSpec(a.shape, lambda g: (0, 0))

    out_slab = pl.pallas_call(
        kernel,
        out_shape=jax.ShapeDtypeStruct((G, Cv, TBN), jnp.float32),
        grid_spec=pltpu.PrefetchScalarGridSpec(
            num_scalar_prefetch=0,
            grid=(G,),
            in_specs=[
                pl.BlockSpec((1, Cx, TBN), lambda g: (g, 0, 0)),   # x slab
                pl.BlockSpec((1, Cy, TBN), lambda g: (g, 0, 0)),   # y slab
                full2d(wqk), full2d(bqk),
                full2d(wvp), full2d(bvp),
                pl.BlockSpec(memory_space=pltpu.MemorySpace.SMEM),  # gamma scalar
            ],
            out_specs=pl.BlockSpec((1, Cv, TBN), lambda g: (g, 0, 0)),
        ),
        compiler_params=pltpu.CompilerParams(
            dimension_semantics=("parallel",),
        ),
    )(x_slab, y_slab, wqk, bqk, wvp, bvp, gamma)

    # Unfold lanes back to (B, Cv, N).
    return out_slab.reshape(G, Cv, batch_block, N).transpose(0, 2, 1, 3).reshape(B, Cv, N)


def _reference(x, y, params):
    """Pure-JAX reference (same math as the PyTorch forward, n_heads=1)."""
    q = jnp.einsum("oc,bcn->bon", params["wq"], x) + params["bq"][None]
    k = jnp.einsum("oc,bcn->bon", params["wk"], x) + params["bk"][None]
    v = jnp.einsum("oc,bcn->bon", params["wv"], y) + params["bv"][None]
    energy = jnp.einsum("bcn,bcm->bnm", q, k)
    attn = jax.nn.softmax(energy, axis=-1)
    out = jnp.einsum("bcm,bnm->bcn", v, attn)
    y_proj = jnp.einsum("oc,bcn->bon", params["wp"], y)
    g = params["gamma"][0, 0]
    return (g * out + y_proj) / (1.0 + g)


def make_params(key, in_channels, out_channels, y_in_channels, y_out_channels):
    ks = jax.random.split(key, 8)
    scale = 0.1
    return {
        "wq": scale * jax.random.normal(ks[0], (out_channels, in_channels), jnp.float32),
        "bq": scale * jax.random.normal(ks[1], (out_channels, 1), jnp.float32),
        "wk": scale * jax.random.normal(ks[2], (out_channels, in_channels), jnp.float32),
        "bk": scale * jax.random.normal(ks[3], (out_channels, 1), jnp.float32),
        "wv": scale * jax.random.normal(ks[4], (y_out_channels, y_in_channels), jnp.float32),
        "bv": scale * jax.random.normal(ks[5], (y_out_channels, 1), jnp.float32),
        "wp": scale * jax.random.normal(ks[6], (y_out_channels, y_in_channels), jnp.float32),
        # gamma = torch.rand(n_heads,1,1,1) + 0.001 (n_heads=1 -> scalar)
        "gamma": jax.random.uniform(ks[7], (1, 1), jnp.float32) + 0.001,
    }


if __name__ == "__main__":
    # Module config: in_channels=4, out_channels=8, y_in_channels=6,
    # y_out_channels=8, n_heads=1, residual=True, kernel_size=1.
    B, Cx, Cy, Cq, Cv, N = 8, 4, 6, 8, 8, 16

    key = jax.random.PRNGKey(0)
    kx, ky, kp = jax.random.split(key, 3)
    x = jax.random.normal(kx, (B, Cx, N), jnp.float32)
    y = jax.random.normal(ky, (B, Cy, N), jnp.float32)
    params = make_params(kp, Cx, Cq, Cy, Cv)

    ref = _reference(x, y, params)

    # f32 path (exact reciprocal, f32 MXU operands) -> tight tolerance.
    out = multi_head_attention_1d(x, y, params, use_bf16=False)
    out = jax.block_until_ready(out)
    assert out.shape == (B, Cv, N), out.shape
    assert jnp.allclose(out, ref, atol=1e-4, rtol=1e-4), float(jnp.max(jnp.abs(out - ref)))

    # bf16 attention-matmul path (native MXU dtype) -> loose tolerance.
    out_bf16 = multi_head_attention_1d(x, y, params, use_bf16=True)
    out_bf16 = jax.block_until_ready(out_bf16)
    assert float(jnp.max(jnp.abs(out_bf16 - ref))) < 5e-2

    print("KERNEL_OK")
</pallas_src>

<mosaic_0001>
module attributes {stable_mosaic.version = 11 : i64} {
  func.func @_mha1d_kernel(%arg0: i32, %arg1: memref<1x4x64xf32, #tpu.memory_space<vmem>>, %arg2: memref<1x6x64xf32, #tpu.memory_space<vmem>>, %arg3: memref<16x4xf32, #tpu.memory_space<vmem>>, %arg4: memref<16x1xf32, #tpu.memory_space<vmem>>, %arg5: memref<16x6xf32, #tpu.memory_space<vmem>>, %arg6: memref<16x1xf32, #tpu.memory_space<vmem>>, %arg7: memref<1x1xf32, #tpu.memory_space<smem>>, %arg8: memref<1x8x64xf32, #tpu.memory_space<vmem>>) attributes {dimension_semantics = [#tpu.dimension_semantics<parallel>], iteration_bounds = array<i64: 2>, scalar_prefetch = 0 : i64, scratch_operands = 0 : i64, tpu.core_type = #tpu.core_type<tc>, window_params = [{transform_indices = @transform_0, window_bounds = array<i64: 1, 4, 64>}, {transform_indices = @transform_1, window_bounds = array<i64: 1, 6, 64>}, {pipeline_mode = #tpu.pipeline_mode<synchronous>, transform_indices = @transform_2, window_bounds = array<i64: 16, 4>}, {pipeline_mode = #tpu.pipeline_mode<synchronous>, transform_indices = @transform_3, window_bounds = array<i64: 16, 1>}, {pipeline_mode = #tpu.pipeline_mode<synchronous>, transform_indices = @transform_4, window_bounds = array<i64: 16, 6>}, {pipeline_mode = #tpu.pipeline_mode<synchronous>, transform_indices = @transform_5, window_bounds = array<i64: 16, 1>}, {transform_indices = @transform_6, window_bounds = array<i64: 1, 1>}, {transform_indices = @transform_7, window_bounds = array<i64: 1, 8, 64>}]} {
    %c0 = arith.constant 0 : index
    %c0_0 = arith.constant 0 : index
    %c0_1 = arith.constant 0 : index
    %0 = vector.load %arg1[%c0, %c0_0, %c0_1] : memref<1x4x64xf32, #tpu.memory_space<vmem>>, vector<1x4x64xf32>
    %1 = vector.shape_cast %0 : vector<1x4x64xf32> to vector<4x64xf32>
    %c0_2 = arith.constant 0 : index
    %c0_3 = arith.constant 0 : index
    %c0_4 = arith.constant 0 : index
    %2 = vector.load %arg2[%c0_2, %c0_3, %c0_4] : memref<1x6x64xf32, #tpu.memory_space<vmem>>, vector<1x6x64xf32>
    %3 = vector.shape_cast %2 : vector<1x6x64xf32> to vector<6x64xf32>
    %c0_5 = arith.constant 0 : index
    %c0_6 = arith.constant 0 : index
    %4 = vector.load %arg3[%c0_5, %c0_6] : memref<16x4xf32, #tpu.memory_space<vmem>>, vector<16x4xf32>
    %cst = arith.constant dense<0.000000e+00> : vector<16x64xf32>
    %5 = tpu.matmul %4, %1, %cst {dimension_numbers = #tpu.dot_dimension_numbers<[1], [0], [0], [1], [0, 0, 1, 1], [], []>} : vector<16x4xf32>, vector<4x64xf32>, vector<16x64xf32> -> vector<16x64xf32>
    %c0_7 = arith.constant 0 : index
    %c0_8 = arith.constant 0 : index
    %6 = vector.load %arg4[%c0_7, %c0_8] : memref<16x1xf32, #tpu.memory_space<vmem>>, vector<16x1xf32>
    %7 = vector.broadcast %6 : vector<16x1xf32> to vector<16x64xf32>
    %8 = arith.addf %5, %7 : vector<16x64xf32>
    %c0_9 = arith.constant 0 : index
    %c0_10 = arith.constant 0 : index
    %9 = vector.load %arg5[%c0_9, %c0_10] : memref<16x6xf32, #tpu.memory_space<vmem>>, vector<16x6xf32>
    %cst_11 = arith.constant dense<0.000000e+00> : vector<16x64xf32>
    %10 = tpu.matmul %9, %3, %cst_11 {dimension_numbers = #tpu.dot_dimension_numbers<[1], [0], [0], [1], [0, 0, 1, 1], [], []>} : vector<16x6xf32>, vector<6x64xf32>, vector<16x64xf32> -> vector<16x64xf32>
    %c0_12 = arith.constant 0 : index
    %c0_13 = arith.constant 0 : index
    %11 = vector.load %arg6[%c0_12, %c0_13] : memref<16x1xf32, #tpu.memory_space<vmem>>, vector<16x1xf32>
    %12 = vector.broadcast %11 : vector<16x1xf32> to vector<16x64xf32>
    %13 = arith.addf %10, %12 : vector<16x64xf32>
    %14 = vector.extract_strided_slice %8 {offsets = [0, 0], sizes = [8, 64], strides = [1, 1]} : vector<16x64xf32> to vector<8x64xf32>
    %15 = vector.extract_strided_slice %8 {offsets = [8, 0], sizes = [8, 64], strides = [1, 1]} : vector<16x64xf32> to vector<8x64xf32>
    %16 = vector.extract_strided_slice %13 {offsets = [0, 0], sizes = [8, 64], strides = [1, 1]} : vector<16x64xf32> to vector<8x64xf32>
    %17 = vector.extract_strided_slice %13 {offsets = [8, 0], sizes = [8, 64], strides = [1, 1]} : vector<16x64xf32> to vector<8x64xf32>
    %18 = vector.extract_strided_slice %14 {offsets = [0, 0], sizes = [8, 16], strides = [1, 1]} : vector<8x64xf32> to vector<8x16xf32>
    %19 = vector.extract_strided_slice %15 {offsets = [0, 0], sizes = [8, 16], strides = [1, 1]} : vector<8x64xf32> to vector<8x16xf32>
    %20 = vector.extract_strided_slice %16 {offsets = [0, 0], sizes = [8, 16], strides = [1, 1]} : vector<8x64xf32> to vector<8x16xf32>
    %cst_14 = arith.constant dense<0.000000e+00> : vector<16x16xf32>
    %21 = tpu.matmul %18, %19, %cst_14 {dimension_numbers = #tpu.dot_dimension_numbers<[0], [0], [1], [1], [0, 1, 1, 1], [], []>} : vector<8x16xf32>, vector<8x16xf32>, vector<16x16xf32> -> vector<16x16xf32>
    %cst_15 = arith.constant dense<0xFF800000> : vector<16xf32>
    %22 = vector.multi_reduction <maximumf>, %21, %cst_15 [1] : vector<16x16xf32> to vector<16xf32>
    %23 = vector.shape_cast %22 : vector<16xf32> to vector<16x1xf32>
    %24 = vector.broadcast %23 : vector<16x1xf32> to vector<16x16xf32>
    %25 = arith.subf %21, %24 : vector<16x16xf32>
    %26 = math.exp %25 : vector<16x16xf32>
    %cst_16 = arith.constant dense<0.000000e+00> : vector<16xf32>
    %27 = vector.multi_reduction <add>, %26, %cst_16 [1] : vector<16x16xf32> to vector<16xf32>
    %28 = vector.shape_cast %27 : vector<16xf32> to vector<16x1xf32>
    %29 = tpu.reciprocal %28 : vector<16x1xf32> -> vector<16x1xf32>
    %30 = vector.broadcast %29 : vector<16x1xf32> to vector<16x16xf32>
    %31 = arith.mulf %26, %30 : vector<16x16xf32>
    %cst_17 = arith.constant dense<0.000000e+00> : vector<8x16xf32>
    %32 = tpu.matmul %20, %31, %cst_17 {dimension_numbers = #tpu.dot_dimension_numbers<[1], [1], [0], [0], [0, 0, 1, 0], [], []>} : vector<8x16xf32>, vector<16x16xf32>, vector<8x16xf32> -> vector<8x16xf32>
    %33 = vector.extract_strided_slice %14 {offsets = [0, 16], sizes = [8, 16], strides = [1, 1]} : vector<8x64xf32> to vector<8x16xf32>
    %34 = vector.extract_strided_slice %15 {offsets = [0, 16], sizes = [8, 16], strides = [1, 1]} : vector<8x64xf32> to vector<8x16xf32>
    %35 = vector.extract_strided_slice %16 {offsets = [0, 16], sizes = [8, 16], strides = [1, 1]} : vector<8x64xf32> to vector<8x16xf32>
    %cst_18 = arith.constant dense<0.000000e+00> : vector<16x16xf32>
    %36 = tpu.matmul %33, %34, %cst_18 {dimension_numbers = #tpu.dot_dimension_numbers<[0], [0], [1], [1], [0, 1, 1, 1], [], []>} : vector<8x16xf32>, vector<8x16xf32>, vector<16x16xf32> -> vector<16x16xf32>
    %cst_19 = arith.constant dense<0xFF800000> : vector<16xf32>
    %37 = vector.multi_reduction <maximumf>, %36, %cst_19 [1] : vector<16x16xf32> to vector<16xf32>
    %38 = vector.shape_cast %37 : vector<16xf32> to vector<16x1xf32>
    %39 = vector.broadcast %38 : vector<16x1xf32> to vector<16x16xf32>
    %40 = arith.subf %36, %39 : vector<16x16xf32>
    %41 = math.exp %40 : vector<16x16xf32>
    %cst_20 = arith.constant dense<0.000000e+00> : vector<16xf32>
    %42 = vector.multi_reduction <add>, %41, %cst_20 [1] : vector<16x16xf32> to vector<16xf32>
    %43 = vector.shape_cast %42 : vector<16xf32> to vector<16x1xf32>
    %44 = tpu.reciprocal %43 : vector<16x1xf32> -> vector<16x1xf32>
    %45 = vector.broadcast %44 : vector<16x1xf32> to vector<16x16xf32>
    %46 = arith.mulf %41, %45 : vector<16x16xf32>
    %cst_21 = arith.constant dense<0.000000e+00> : vector<8x16xf32>
    %47 = tpu.matmul %35, %46, %cst_21 {dimension_numbers = #tpu.dot_dimension_numbers<[1], [1], [0], [0], [0, 0, 1, 0], [], []>} : vector<8x16xf32>, vector<16x16xf32>, vector<8x16xf32> -> vector<8x16xf32>
    %48 = vector.extract_strided_slice %14 {offsets = [0, 32], sizes = [8, 16], strides = [1, 1]} : vector<8x64xf32> to vector<8x16xf32>
    %49 = vector.extract_strided_slice %15 {offsets = [0, 32], sizes = [8, 16], strides = [1, 1]} : vector<8x64xf32> to vector<8x16xf32>
    %50 = vector.extract_strided_slice %16 {offsets = [0, 32], sizes = [8, 16], strides = [1, 1]} : vector<8x64xf32> to vector<8x16xf32>
    %cst_22 = arith.constant dense<0.000000e+00> : vector<16x16xf32>
    %51 = tpu.matmul %48, %49, %cst_22 {dimension_numbers = #tpu.dot_dimension_numbers<[0], [0], [1], [1], [0, 1, 1, 1], [], []>} : vector<8x16xf32>, vector<8x16xf32>, vector<16x16xf32> -> vector<16x16xf32>
    %cst_23 = arith.constant dense<0xFF800000> : vector<16xf32>
    %52 = vector.multi_reduction <maximumf>, %51, %cst_23 [1] : vector<16x16xf32> to vector<16xf32>
    %53 = vector.shape_cast %52 : vector<16xf32> to vector<16x1xf32>
    %54 = vector.broadcast %53 : vector<16x1xf32> to vector<16x16xf32>
    %55 = arith.subf %51, %54 : vector<16x16xf32>
    %56 = math.exp %55 : vector<16x16xf32>
    %cst_24 = arith.constant dense<0.000000e+00> : vector<16xf32>
    %57 = vector.multi_reduction <add>, %56, %cst_24 [1] : vector<16x16xf32> to vector<16xf32>
    %58 = vector.shape_cast %57 : vector<16xf32> to vector<16x1xf32>
    %59 = tpu.reciprocal %58 : vector<16x1xf32> -> vector<16x1xf32>
    %60 = vector.broadcast %59 : vector<16x1xf32> to vector<16x16xf32>
    %61 = arith.mulf %56, %60 : vector<16x16xf32>
    %cst_25 = arith.constant dense<0.000000e+00> : vector<8x16xf32>
    %62 = tpu.matmul %50, %61, %cst_25 {dimension_numbers = #tpu.dot_dimension_numbers<[1], [1], [0], [0], [0, 0, 1, 0], [], []>} : vector<8x16xf32>, vector<16x16xf32>, vector<8x16xf32> -> vector<8x16xf32>
    %63 = vector.extract_strided_slice %14 {offsets = [0, 48], sizes = [8, 16], strides = [1, 1]} : vector<8x64xf32> to vector<8x16xf32>
    %64 = vector.extract_strided_slice %15 {offsets = [0, 48], sizes = [8, 16], strides = [1, 1]} : vector<8x64xf32> to vector<8x16xf32>
    %65 = vector.extract_strided_slice %16 {offsets = [0, 48], sizes = [8, 16], strides = [1, 1]} : vector<8x64xf32> to vector<8x16xf32>
    %cst_26 = arith.constant dense<0.000000e+00> : vector<16x16xf32>
    %66 = tpu.matmul %63, %64, %cst_26 {dimension_numbers = #tpu.dot_dimension_numbers<[0], [0], [1], [1], [0, 1, 1, 1], [], []>} : vector<8x16xf32>, vector<8x16xf32>, vector<16x16xf32> -> vector<16x16xf32>
    %cst_27 = arith.constant dense<0xFF800000> : vector<16xf32>
    %67 = vector.multi_reduction <maximumf>, %66, %cst_27 [1] : vector<16x16xf32> to vector<16xf32>
    %68 = vector.shape_cast %67 : vector<16xf32> to vector<16x1xf32>
    %69 = vector.broadcast %68 : vector<16x1xf32> to vector<16x16xf32>
    %70 = arith.subf %66, %69 : vector<16x16xf32>
    %71 = math.exp %70 : vector<16x16xf32>
    %cst_28 = arith.constant dense<0.000000e+00> : vector<16xf32>
    %72 = vector.multi_reduction <add>, %71, %cst_28 [1] : vector<16x16xf32> to vector<16xf32>
    %73 = vector.shape_cast %72 : vector<16xf32> to vector<16x1xf32>
    %74 = tpu.reciprocal %73 : vector<16x1xf32> -> vector<16x1xf32>
    %75 = vector.broadcast %74 : vector<16x1xf32> to vector<16x16xf32>
    %76 = arith.mulf %71, %75 : vector<16x16xf32>
    %cst_29 = arith.constant dense<0.000000e+00> : vector<8x16xf32>
    %77 = tpu.matmul %65, %76, %cst_29 {dimension_numbers = #tpu.dot_dimension_numbers<[1], [1], [0], [0], [0, 0, 1, 0], [], []>} : vector<8x16xf32>, vector<16x16xf32>, vector<8x16xf32> -> vector<8x16xf32>
    %78 = tpu.concatenate %32, %47, %62, %77 in 1 : vector<8x16xf32>, vector<8x16xf32>, vector<8x16xf32>, vector<8x16xf32> -> vector<8x64xf32>
    %c0_30 = arith.constant 0 : index
    %c0_31 = arith.constant 0 : index
    %79 = memref.load %arg7[%c0_30, %c0_31] : memref<1x1xf32, #tpu.memory_space<smem>>
    %cst_32 = arith.constant 1.000000e+00 : f32
    %80 = arith.addf %cst_32, %79 : f32
    %cst_33 = arith.constant 1.000000e+00 : f32
    %81 = arith.divf %cst_33, %80 : f32
    %82 = arith.mulf %79, %81 : f32
    %83 = vector.broadcast %82 : f32 to vector<8x64xf32>
    %84 = arith.mulf %83, %78 : vector<8x64xf32>
    %85 = vector.broadcast %81 : f32 to vector<8x64xf32>
    %86 = arith.mulf %85, %17 : vector<8x64xf32>
    %87 = arith.addf %84, %86 : vector<8x64xf32>
    %c0_34 = arith.constant 0 : index
    %c0_35 = arith.constant 0 : index
    %c0_36 = arith.constant 0 : index
    %88 = vector.load %arg8[%c0_34, %c0_35, %c0_36] : memref<1x8x64xf32, #tpu.memory_space<vmem>>, vector<1x8x64xf32>
    %89 = vector.shape_cast %88 : vector<1x8x64xf32> to vector<8x64xf32>
    %90 = vector.shape_cast %87 : vector<8x64xf32> to vector<1x8x64xf32>
    tpu.vector_store %arg8[%c0_34, %c0_35, %c0_36], %90 {strides = array<i32>} : memref<1x8x64xf32, #tpu.memory_space<vmem>>, vector<1x8x64xf32>,
    return
  }
  func.func @transform_0(%arg0: i32) -> (i32, i32, i32) {
    %c0_i32 = arith.constant 0 : i32
    %c0_i32_0 = arith.constant 0 : i32
    %c0_i32_1 = arith.constant 0 : i32
    return %arg0, %c0_i32, %c0_i32_0 : i32, i32, i32
  }
  func.func @transform_1(%arg0: i32) -> (i32, i32, i32) {
    %c0_i32 = arith.constant 0 : i32
    %c0_i32_0 = arith.constant 0 : i32
    %c0_i32_1 = arith.constant 0 : i32
    return %arg0, %c0_i32, %c0_i32_0 : i32, i32, i32
  }
  func.func @transform_2(%arg0: i32) -> (i32, i32) {
    %c0_i32 = arith.constant 0 : i32
    %c0_i32_0 = arith.constant 0 : i32
    %c0_i32_1 = arith.constant 0 : i32
    return %c0_i32, %c0_i32_0 : i32, i32
  }
  func.func @transform_3(%arg0: i32) -> (i32, i32) {
    %c0_i32 = arith.constant 0 : i32
    %c0_i32_0 = arith.constant 0 : i32
    %c0_i32_1 = arith.constant 0 : i32
    return %c0_i32, %c0_i32_0 : i32, i32
  }
  func.func @transform_4(%arg0: i32) -> (i32, i32) {
    %c0_i32 = arith.constant 0 : i32
    %c0_i32_0 = arith.constant 0 : i32
    %c0_i32_1 = arith.constant 0 : i32
    return %c0_i32, %c0_i32_0 : i32, i32
  }
  func.func @transform_5(%arg0: i32) -> (i32, i32) {
    %c0_i32 = arith.constant 0 : i32
    %c0_i32_0 = arith.constant 0 : i32
    %c0_i32_1 = arith.constant 0 : i32
    return %c0_i32, %c0_i32_0 : i32, i32
  }
  func.func @transform_6(%arg0: i32) -> (i32, i32) {
    %c0_i32 = arith.constant 0 : i32
    %c0_i32_0 = arith.constant 0 : i32
    %c0_i32_1 = arith.constant 0 : i32
    return %c0_i32, %c0_i32_0 : i32, i32
  }
  func.func @transform_7(%arg0: i32) -> (i32, i32, i32) {
    %c0_i32 = arith.constant 0 : i32
    %c0_i32_0 = arith.constant 0 : i32
    %c0_i32_1 = arith.constant 0 : i32
    return %arg0, %c0_i32, %c0_i32_0 : i32, i32, i32
  }
}

</mosaic_0001>

<bundles_post_ra>
// kernel: tpu_custom_call.1
= control target key start
LH: loop header
LB: loop body
LE: loop exit
PB: predicated region body
PF: predicated region fallthrough
CT: control target
= control target key end

     0   :  { %s2058_s0 = inlined_call_operand.vmem [shape: f32[2,4,64], index: 0, kind: input, shape index: {}]   ;;  %s2059_s1 = inlined_call_operand.vmem [shape: f32[2,6,64], index: 1, kind: input, shape index: {}]   ;;  %s2060_s2 = inlined_call_operand.vmem [shape: f32[16,4], index: 2, kind: input, shape index: {}]   ;;  %s2061_s3 = inlined_call_operand.vmem [shape: f32[16,1], index: 3, kind: input, shape index: {}]   ;;  %s2062_s4 = inlined_call_operand.vmem [shape: f32[16,6], index: 4, kind: input, shape index: {}]   ;;  %s2063_s5 = inlined_call_operand.vmem [shape: f32[16,1], index: 5, kind: input, shape index: {}]   ;;  %s2064_s6 = inlined_call_operand.<no memory space> [shape: f32[1,1], index: 6, kind: input, shape index: {}]   ;;  %s2065_s7 = inlined_call_operand.hbm [shape: f32[2,8,64], index: 7, kind: output, shape index: {}]  }
   0x1   :  { %12 = sst [smem:[#allocation2]] %s2064_s6 }
   0x2   :  { %13 = vsyncpa [#allocation4], 0 }
   0x3   :  { %15 = vsyncpa [#allocation4 + $0x1], 0  ;;  %s1836_s26 = smov 0   ;;  %s1838_s27 = smov 0  }
   0x4   :  { %s1840_s28 = smov 0   ;;  %s1842_s29 = smov 0  }
   0x5 LB: > { %s1857_s6 = sadd.s32 4294967295, %s1780_s29   ;;  %s1490_s30 = sadd.s32 4294967294, %s1780_s29   ;;  %s1780_s29 = sphi %s1842_s29, %s2073_s29   ;;  %s1776_s28 = sphi %s1840_s28, %s2072_s28   ;;  %s1772_s27 = sphi %s1838_s27, %s2071_s27   ;;  %s1768_s26 = sphi %s1836_s26, %s2070_s26  }
   0x6   : > { %s1861_s8 = sadd.s32 1, %s1780_s29   ;;  %s185_s9 = sadd.s32 1, %s1776_s28 }
   0x7   : > { %s182_s10 = ssub.s32 %s1780_s29, %s1861_s8  ;;  %p195_p0 = scmp.ne.s32.totalorder %s1776_s28, %s1772_s27 }
   0x8   : > { %p183_p1 = scmp.eq.s32.totalorder %s182_s10, 0  ;;  %p196_p2 = scmp.eq.s32.totalorder %s1857_s6, 1 }
   0x9   : > { %p201_p3 = scmp.ne.s32.totalorder %s1772_s27, %s1768_s26  ;;  %p202_p4 = scmp.eq.s32.totalorder %s1490_s30, 1 }
   0xa   : > { %s1872_s11 = scalar_select %p183_p1, %s1776_s28, %s185_s9  }
   0xb   : > { %p1874_p5 = por %p196_p2, %p195_p0  ;;  %p1878_p6 = por %p202_p4, %p201_p3 }
   0xc   : > { %p1493_p7 = scmp.ge.s32.totalorder %s1780_s29, 1  ;;  %p249_p8 = scmp.lt.s32.totalorder %s1780_s29, 3 }
   0xe   : > { %p250_p9 = pnand %p1493_p7, %p249_p8 }
   0xf   : > { %p284_p10 = scmp.lt.s32.totalorder (!%p250_p9), %s1857_s6, 1  ;;  %v294_v0 = vld [vmem:[%s2060_s2] sm:$0xff] (!%p250_p9)  ;;  %vm308_vm0 = vcmask (!%p250_p9), 31744   ;;  %v1782_v1 = vmov (!%p250_p9), 0   ;;  %v297_v3 = vld [vmem:[%s2061_s3 + $0x8] sm:$0xff] (!%p250_p9)  ;;  %vm315_vm1 = vcmask (!%p250_p9), 1043456  }
  0x10   : > { %253 = sbr.rel (%p250_p9) target bundleno = 2035 (0x7f3), region = 48  ;;  %1559 = vmatprep.mubr.msk.f32.mxu1 (!%p250_p9), %vm308_vm0, %v294_v0  ;;  %1682 = vset.pattern.permute.xlu0 (!%p250_p9), %v1782_v1  ;;  %v296_v2 = vld [vmem:[%s2061_s3] sm:$0xff] (!%p250_p9)  ;;  %v295_v5 = vld [vmem:[%s2060_s2 + $0x8] sm:$0xff] (!%p250_p9)  ;;  %s1783_s9 = smov (!%p250_p9), 112   ;;  %vm415_vm2 = vcmask (!%p250_p9), 1045504   ;;  %vm408_vm3 = vcmask (!%p250_p9), 48128  }
  0x11   : > { %300 = vperm.xlu0 (!%p250_p9), %1682, %v296_v2   ;;  %v394_v14 = vld [vmem:[%s2062_s4] sm:$0xff] (!%p250_p9)  ;;  %v395_v16 = vld [vmem:[%s2062_s4 + $0x8] sm:$0xff] (!%p250_p9)  ;;  %vm526_vm4 = vcmask (!%p250_p9), 64512   ;;  %vm608_vm5 = vcmask (!%p250_p9), 130048   ;;  %s1784_s23 = smov (!%p250_p9), 96   ;;  %v1786_v44 = vmov (!%p250_p9), 0.0|0.0  }
  0x12   : > { %v396_v25 = vld [vmem:[%s2063_s5] sm:$0xff] (!%p250_p9)  ;;  %vm1787_vm6 = vmmov (!%p250_p9), 0   ;;  %v1788_v45 = vmov (!%p250_p9), 0.0   ;;  %vm1962_vm7 = vmpackc.low (!%p250_p9), %vm608_vm5, %vm608_vm5  ;;  %s1989_s25 = sld [smem:[#allocation2]] (!%p250_p9)  ;;  %s1789_s14 = smov (!%p250_p9), 16   ;;  %vm1388_vm8 = vcmask (!%p250_p9), 261120  }
  0x13   : > { %s1790_s15 = smov (!%p250_p9), 32   ;;  %s1791_s16 = smov (!%p250_p9), 48   ;;  %vm1390_vm9 = vcmask (!%p250_p9), 392192   ;;  %vm1403_vm10 = vcmask (!%p250_p9), 523264  }
  0x14   : > { %s281_s17 = sand.u32 (!%p250_p9), 1, %s1772_s27  }
  0x15   : > { %305 = vperm.xlu0 (!%p250_p9), %1682, %v297_v3  }
  0x17   : > { %s1893_s18 = scalar_select %p284_p10, %s1857_s6, 1 }
  0x18   : > { %s1393_s30 = sadd.f32 1.0, %s1989_s25 }
  0x19   : > { %s1495_s21 = sshll.u32 %s1893_s18, 2  ;;  %s1496_s10 = sshll.u32 %s1893_s18, 3 }
  0x1a   : > { %s287_s24 = scalar_lea.vmem %s2058_s0, %s1495_s21  ;;  %s291_s19 = scalar_lea.vmem %s2059_s1, %s1496_s10 }
  0x1b   : > { %v292_v4 = vld [vmem:[%s287_s24] sm:$0xf]  ;;  %s1785_s24 = smov 80   ;;  %s1494_s21 = sshll.u32 %s281_s17, 3 }
  0x1c   : > { %1557 = vmatprep.subr.msk.mxu1 %vm315_vm1, %v292_v4  ;;  %v293_v15 = vld [vmem:[%s291_s19] sm:$0x3f]  ;;  %s1524_s18 = sshll.u32 %s1857_s6, 7  ;;  %s283_s22 = scalar_lea.vmem [#allocation3], %s1494_s21 }
  0x1d   : > { %1558 = vmatpush3.msk.msra.mxu1 %vm315_vm1, %v292_v4  ;;  %s1792_s6 = smov [#allocation3]  }
  0x1e   : > { %1560 = vmatmul.mubr.msk.f32.vlgmr.msra.gmra.mrb[0].mxu1 %vm308_vm0, %v295_v5  ;;  %1562 = vmatprep.subr.msk.mxu1 %vm415_vm2, %v293_v15 }
  0x1f   : > { %1564 = vmatprep.mubr.msk.f32.mxu1 %vm408_vm3, %v394_v14  ;;  %1563 = vmatpush3.msk.msra.mxu1 %vm415_vm2, %v293_v15 }
  0x20   : > { %1615 = vmatprep.subr.bf16.mxu1 %v1786_v44 }
  0x22   : > { %1565 = vmatmul.mubr.msk.f32.vlgmr.msra.gmra.mrb[2].mxu1 %vm408_vm3, %v395_v16 }
  0x23   : > { %1576 = vmatprep.mubr.msk.f32.mxu1 %vm1787_vm6, %v1788_v45 }
  0x90   : > { %v301_v6 = vpop.permute.xlu0 %300 }
  0x94   : > { %v306_v7 = vpop.permute.xlu0 %305 }
  0xf1   : > { %v1561_v8 = vpop.f32.mrb[0].mxu1 }
  0xf2   : > { %v1906_v9 = vadd.f32 %v1561_v8, %v306_v7  ;;  %v385_v10 = vpop.f32.mrb[1].mxu1 }
  0xf3   : > { %v1908_v11 = vadd.f32 %v385_v10, %v301_v6 }
  0xf4   : > { %1567 = vmatprep.subr.mxu0 %v1906_v9 }
  0xf5   : > { %1568 = vmatpush3.msra.mxu0 %v1906_v9  ;;  %494 = vxpose.xlu0.b32.start.end [1/1] (short) (narrow) %v1908_v11, 16  ;;  %v1936_v26 = vpop.f32.mrb[2].mxu1 }
  0xf6   : > { %711 = vrot.lane.b32.xlu1 %v1908_v11, %s1783_s9  ;;  %v485_v27 = vpop.f32.mrb[3].mxu1 }
  0xfa   : > { %747 = vrot.lane.b32.xlu1 %v1906_v9, %s1783_s9 }
 0x168   : > { %v712_v12 = vpop.permute.xlu1 %711 }
 0x169   : > { %714 = vxpose.xlu1.b32.start.end [1/1] (short) (narrow) %v712_v12, 16 }
 0x16c   : > { %v748_v13 = vpop.permute.xlu1 %747 }
 0x16d   : > { %1579 = vmatprep.subr.mxu0 %v748_v13 }
 0x175   : > { %v510_v17 = vpop.trf.xlu0 }
 0x176   : > { %1569 = vmatprep.mubr.msk.f32.mxu0 %vm526_vm4, %v510_v17 }
 0x179   : > { %v511_v18 = vpop.trf.xlu0 }
 0x17a   : > { %1570 = vmatmul.mubr.msk.f32.vlgmr.msra.gmra.mrb[0].mxu0 %vm526_vm4, %v511_v18 }
 0x17b   : > { %1580 = vmatpush3.msra.mxu0 %v748_v13 }
 0x17c   : > { %1619 = vmatprep.subr.bf16.mxu0 %v1786_v44 }
 0x187   : > { %1683 = vset.pattern.permute.xlu1 %v1782_v1 }
 0x1e9   : > { %v730_v19 = vpop.trf.xlu1 }
 0x1ea   : > { %1581 = vmatprep.mubr.msk.f32.mxu0 %vm526_vm4, %v730_v19 }
 0x1ed   : > { %v731_v20 = vpop.trf.xlu1 }
 0x1ee   : > { %1582 = vmatmul.mubr.msk.f32.vlgmr.msra.gmra.mrb[2].mxu0 %vm526_vm4, %v731_v20 }
 0x1ef   : > { %1588 = vmatprep.mubr.msk.f32.mxu0 %vm1787_vm6, %v1788_v45 }
 0x24d   : > { %v1571_v21 = vpop.f32.mrb[0].mxu0 }
 0x24e   : > { %v599_v22 = vpop.f32.mrb[1].mxu0  ;;  %v612_v23 = vsel %vm608_vm5, %v1571_v21, -inf }
 0x24f   : > { %613 = vmax.xlane.f32.xlu1 %v612_v23  ;;  %v609_v24 = vsel %vm608_vm5, %v599_v22, -inf }
 0x250   : > { %610 = vmax.xlane.f32.xlu0 %v609_v24 }
 0x260   : > { %400 = vperm.xlu1 %1683, %v396_v25  }
 0x264   : > { %933 = vrot.lane.b32.xlu1 %v1908_v11, %s1784_s23 }
 0x2c1   : > { %v1583_v28 = vpop.f32.mrb[2].mxu0 }
 0x2c2   : > { %v822_v29 = vpop.f32.mrb[3].mxu0  ;;  %v834_v31 = vsel %vm608_vm5, %v1583_v28, -inf }
 0x2c3   : > { %v831_v30 = vsel %vm608_vm5, %v822_v29, -inf }
 0x2c4   : > { %832 = vmax.xlane.f32.xlu0 %v831_v30 }
 0x2c8   : > { %835 = vmax.xlane.f32.xlu0 %v834_v31 }
 0x2dc   : > { %v614_v32 = vpop.xlane.xlu1 %613 }
 0x2dd   : > { %v616_v33 = vsub.f32 %v1571_v21, %v614_v32  ;;  %v611_v34 = vpop.xlane.xlu0 %610 }
 0x2de   : > { %v615_v35 = vsub.f32 %v599_v22, %v611_v34 }
 0x2df   : > { %v619_v36 = vmul.f32 1.442695, %v616_v33 }
 0x2e0   : > { %v617_v37 = vmul.f32 1.442695, %v615_v35  ;;  %v401_v38 = vpop.permute.xlu1 %400 }
 0x2e1   : > { %1684 = vpow2.f32 %v619_v36  ;;  %v1942_v39 = vadd.f32 %v485_v27, %v401_v38 }
 0x2e2   : > { %1686 = vpow2.f32 %v617_v37 }
 0x2e3   : > { %853 = vrot.lane.b32.xlu1 %v1942_v39, %s1783_s9  ;;  %s1406_s9 = scalar_lea.sflag [#allocation4], %s281_s17 }
 0x2e4   : > { %v934_v46 = vpop.permute.xlu1 %933 }
 0x2e7   : > { %968 = vrot.lane.b32.xlu1 %v1906_v9, %s1784_s23 }
 0x2eb   : > { %v1685_v40 = vpop.eup %1684  ;;  %1189 = vrot.lane.b32.xlu1 %v1906_v9, %s1785_s24 }
 0x2ec   : > { %v624_v41 = vsel %vm608_vm5, %v1685_v40, 0.0  ;;  %v1687_v42 = vpop.eup %1686 }
 0x2ed   : > { %625 = vadd.xlane.f32.xlu0 %v624_v41  ;;  %v621_v43 = vsel %vm608_vm5, %v1687_v42, 0.0 }
 0x2f1   : > { %622 = vadd.xlane.f32.xlu0 %v621_v43 }
 0x314   : > { %936 = vxpose.xlu1.b32.start.end [1/1] (short) (narrow) %v934_v46, 16 }
 0x351   : > { %v833_v47 = vpop.xlane.xlu0 %832 }
 0x352   : > { %v837_v48 = vsub.f32 %v822_v29, %v833_v47 }
 0x354   : > { %v839_v51 = vmul.f32 1.442695, %v837_v48 }
 0x355   : > { %v836_v49 = vpop.xlane.xlu0 %835  ;;  %v854_v59 = vpop.permute.xlu1 %853 }
 0x356   : > { %v838_v50 = vsub.f32 %v1583_v28, %v836_v49 }
 0x358   : > { %v841_v52 = vmul.f32 1.442695, %v838_v50 }
 0x359   : > { %v969_v62 = vpop.permute.xlu1 %968 }
 0x35a   : > { %1688 = vpow2.f32 %v841_v52 }
 0x35b   : > { %1690 = vpow2.f32 %v839_v51 }
 0x35d   : > { %v1190_v3 = vpop.permute.xlu1 %1189 }
 0x364   : > { %v1689_v53 = vpop.eup %1688 }
 0x365   : > { %v846_v54 = vsel %vm608_vm5, %v1689_v53, 0.0  ;;  %v1691_v55 = vpop.eup %1690 }
 0x366   : > { %847 = vadd.xlane.f32.xlu0 %v846_v54  ;;  %v843_v56 = vsel %vm608_vm5, %v1691_v55, 0.0 }
 0x36a   : > { %844 = vadd.xlane.f32.xlu0 %v843_v56 }
 0x37a   : > { %v626_v57 = vpop.xlane.xlu0 %625 }
 0x37b   : > { %1692 = vrcp.f32 %v626_v57 }
 0x37e   : > { %v623_v58 = vpop.xlane.xlu0 %622 }
 0x37f   : > { %1694 = vrcp.f32 %v623_v58 }
 0x380   : > { %1154 = vrot.lane.b32.xlu0 %v1908_v11, %s1785_s24 }
 0x385   : > { %v1693_v60 = vpop.eup %1692 }
 0x386   : > { %v630_v63 = vmul.f32 %v1693_v60, %v1685_v40  ;;  %v1394_v40 = vstv %s1393_s30  ;;  %s2016_s30 = scalar_lea.hbm %s2065_s7, %s1524_s18 }
 0x389   : > { %v1695_v61 = vpop.eup %1694 }
 0x38a   : > { %v629_v0 = vmul.f32 %v1695_v61, %v1687_v42 }
 0x38c   : > { %v1616_v2 = vpack.c.bf16 %v630_v63, %v629_v0 }
 0x38e   : > { %1618 = vmatpush3.bf16.xpose.msk.msra.mxu1 %vm1962_vm7, %v1616_v2 }
 0x38f   : > { %1591 = vmatprep.subr.mxu1 %v969_v62 }
 0x394   : > { %v952_v4 = vpop.trf.xlu1 }
 0x395   : > { %1577 = vmatmul.mubr.msk.f32.vlgmr.msra.gmra.mrb[4].mxu1 %vm608_vm5, %v1942_v39 }
 0x396   : > { %1592 = vmatpush3.msra.mxu1 %v969_v62  ;;  %1593 = vmatprep.mubr.msk.f32.mxu1 %vm526_vm4, %v952_v4 }
 0x397   : > { %1623 = vmatprep.subr.bf16.mxu1 %v1786_v44 }
 0x398   : > { %v953_v5 = vpop.trf.xlu1 }
 0x399   : > { %1594 = vmatmul.mubr.msk.f32.vlgmr.msra.gmra.mrb[6].mxu1 %vm526_vm4, %v953_v5 }
 0x39a   : > { %1600 = vmatprep.mubr.msk.f32.mxu1 %vm1787_vm6, %v1788_v45 }
 0x3f3   : > { %v848_v6 = vpop.xlane.xlu0 %847 }
 0x3f4   : > { %1696 = vrcp.f32 %v848_v6 }
 0x3f7   : > { %v845_v7 = vpop.xlane.xlu0 %844 }
 0x3f8   : > { %1698 = vrcp.f32 %v845_v7 }
 0x3fb   : > { %v1155_v8 = vpop.permute.xlu0 %1154 }
 0x3fc   : > { %1157 = vxpose.xlu0.b32.start.end [1/1] (short) (narrow) %v1155_v8, 16 }
 0x3fe   : > { %v1697_v9 = vpop.eup %1696 }
 0x3ff   : > { %v852_v11 = vmul.f32 %v1697_v9, %v1689_v53 }
 0x402   : > { %v1699_v10 = vpop.eup %1698 }
 0x403   : > { %v851_v12 = vmul.f32 %v1699_v10, %v1691_v55 }
 0x405   : > { %v1620_v13 = vpack.c.bf16 %v852_v11, %v851_v12 }
 0x407   : > { %1622 = vmatpush3.bf16.xpose.msk.msra.mxu0 %vm1962_vm7, %v1620_v13 }
 0x408   : > { %1603 = vmatprep.subr.mxu0 %v1190_v3 }
 0x40e   : > { %1589 = vmatmul.mubr.msk.f32.vlgmr.msra.gmra.mrb[4].mxu0 %vm608_vm5, %v854_v59  ;;  %v397_v59 = vld [vmem:[%s2063_s5 + $0x8] sm:$0xff] }
 0x40f   : > { %1604 = vmatpush3.msra.mxu0 %v1190_v3 }
 0x410   : > { %1627 = vmatprep.subr.bf16.mxu0 %v1786_v44 }
 0x468   : > { %v1977_v14 = vpop.f32.mrb[4].mxu1 }
 0x469   : > { %v1578_v15 = vpop.f32.mrb[5].mxu1 }
 0x46c   : > { %v1595_v16 = vpop.f32.mrb[6].mxu1 }
 0x46d   : > { %v1043_v17 = vpop.f32.mrb[7].mxu1  ;;  %v1055_v18 = vsel %vm608_vm5, %v1595_v16, -inf }
 0x46e   : > { %1056 = vmax.xlane.f32.xlu1 %v1055_v18  ;;  %v1052_v19 = vsel %vm608_vm5, %v1043_v17, -inf }
 0x46f   : > { %1053 = vmax.xlane.f32.xlu0 %v1052_v19 }
 0x47c   : > { %v1173_v20 = vpop.trf.xlu0 }
 0x47d   : > { %1605 = vmatprep.mubr.msk.f32.mxu0 %vm526_vm4, %v1173_v20 }
 0x480   : > { %v1174_v21 = vpop.trf.xlu0 }
 0x481   : > { %1606 = vmatmul.mubr.msk.f32.vlgmr.msra.gmra.mrb[6].mxu0 %vm526_vm4, %v1174_v21 }
 0x482   : > { %1612 = vmatprep.mubr.msk.f32.mxu0 %vm1787_vm6, %v1788_v45 }
 0x4e1   : > { %v929_v22 = vpop.f32.mrb[4].mxu0 }
 0x4e2   : > { %v1590_v23 = vpop.f32.mrb[5].mxu0 }
 0x4fb   : > { %v1057_v24 = vpop.xlane.xlu1 %1056 }
 0x4fc   : > { %v1054_v25 = vpop.xlane.xlu0 %1053  ;;  %v1059_v27 = vsub.f32 %v1595_v16, %v1057_v24 }
 0x4fd   : > { %v1058_v28 = vsub.f32 %v1043_v17, %v1054_v25 }
 0x4fe   : > { %v1062_v29 = vmul.f32 1.442695, %v1059_v27 }
 0x4ff   : > { %v1060_v30 = vmul.f32 1.442695, %v1058_v28 }
 0x500   : > { %1700 = vpow2.f32 %v1062_v29 }
 0x501   : > { %1702 = vpow2.f32 %v1060_v30 }
 0x502   : > { %1704 = vrcp.f32 %v1394_v40 }
 0x50a   : > { %v1701_v31 = vpop.eup %1700 }
 0x50b   : > { %v1703_v33 = vpop.eup %1702  ;;  %v1067_v37 = vsel %vm608_vm5, %v1701_v31, 0.0 }
 0x50c   : > { %v1064_v38 = vsel %vm608_vm5, %v1703_v33, 0.0  ;;  %v1705_v41 = vpop.eup %1704 }
 0x50d   : > { %1631 = vpush %v1705_v41 }
 0x53e   : > { %s1632_s19 = spop %1631 }
 0x53f   : > { %s1397_s20 = smul.f32 %s1632_s19, %s1989_s25  ;;  %v1400_v13 = vstv %s1632_s19 }
 0x541   : > { %v1398_v12 = vstv %s1397_s20 }
 0x554   : > { %v1607_v32 = vpop.f32.mrb[6].mxu0 }
 0x555   : > { %v1264_v34 = vpop.f32.mrb[7].mxu0  ;;  %v1276_v35 = vsel %vm608_vm5, %v1607_v32, -inf }
 0x556   : > { %1277 = vmax.xlane.f32.xlu0 %v1276_v35  ;;  %v1273_v36 = vsel %vm608_vm5, %v1264_v34, -inf }
 0x557   : > { %1274 = vmax.xlane.f32.xlu1 %v1273_v36 }
 0x55a   : > { %1068 = vadd.xlane.f32.xlu0 %v1067_v37 }
 0x55b   : > { %1065 = vadd.xlane.f32.xlu1 %v1064_v38 }
 0x5e3   : > { %v1278_v42 = vpop.xlane.xlu0 %1277 }
 0x5e4   : > { %v1280_v43 = vsub.f32 %v1607_v32, %v1278_v42  ;;  %v1275_v44 = vpop.xlane.xlu1 %1274 }
 0x5e5   : > { %v1279_v45 = vsub.f32 %v1264_v34, %v1275_v44 }
 0x5e6   : > { %v1283_v46 = vmul.f32 1.442695, %v1280_v43 }
 0x5e7   : > { %v1281_v47 = vmul.f32 1.442695, %v1279_v45  ;;  %v1069_v48 = vpop.xlane.xlu0 %1068 }
 0x5e8   : > { %1706 = vpow2.f32 %v1283_v46  ;;  %v1066_v49 = vpop.xlane.xlu1 %1065 }
 0x5e9   : > { %1708 = vpow2.f32 %v1281_v47 }
 0x5ea   : > { %1710 = vrcp.f32 %v1069_v48 }
 0x5eb   : > { %1712 = vrcp.f32 %v1066_v49 }
 0x5f2   : > { %v1707_v50 = vpop.eup %1706 }
 0x5f3   : > { %v1709_v51 = vpop.eup %1708  ;;  %v1288_v52 = vsel %vm608_vm5, %v1707_v50, 0.0 }
 0x5f4   : > { %v1711_v53 = vpop.eup %1710  ;;  %1289 = vadd.xlane.f32.xlu0 %v1288_v52  ;;  %v1285_v54 = vsel %vm608_vm5, %v1709_v51, 0.0 }
 0x5f5   : > { %v1713_v55 = vpop.eup %1712  ;;  %v1073_v56 = vmul.f32 %v1711_v53, %v1701_v31  ;;  %1286 = vadd.xlane.f32.xlu1 %v1285_v54 }
 0x5f6   : > { %v1072_v57 = vmul.f32 %v1713_v55, %v1703_v33 }
 0x5f8   : > { %v1624_v58 = vpack.c.bf16 %v1073_v56, %v1072_v57 }
 0x5fa   : > { %1626 = vmatpush3.bf16.xpose.msk.msra.mxu1 %vm1962_vm7, %v1624_v58 }
 0x606   : > { %1074 = vrot.lane.b32.xlu1 %v1942_v39, %s1784_s23  ;;  %s1419_s23 = sshll.u32 %s283_s22, 4  ;;  %s2018_s23 = int_to_ptr.vmem [resolvable:$true] %s1419_s23 }
 0x607   : > { %s1718_s10 = scalar_lea.vmem %s2018_s23, 128 }
 0x608   : > { %p1719_p11 = scmp.ne.s32.totalorder %s2018_s23, %s1718_s10 }
 0x60a   : > { %405 = vperm.xlu1 %1683, %v397_v59   ;;  %1295 = vrot.lane.b32.xlu0 %v1942_v39, %s1785_s24  ;;  %p1720_p12 = pnand %p1719_p11, %p1874_p5 }
 0x60c   : > { %p1721_p13 = pneg %p1720_p12 }
 0x60e   : > { %1376 = vrot.lane.b32.xlu1 %v929_v22, %s1789_s14  ;;  %s1722_s14 = sshll.u32 %s1792_s6, 4  ;;  %s1723_s14 = int_to_ptr.vmem [resolvable:$false] %s1722_s14 }
 0x60f   : > { %p1725_p0 = scmp.lt.s32.totalorder %s2018_s23, %s1723_s14 }
 0x681   : > { %v1290_v60 = vpop.xlane.xlu0 %1289 }
 0x682   : > { %1714 = vrcp.f32 %v1290_v60  ;;  %v1287_v61 = vpop.xlane.xlu1 %1286 }
 0x683   : > { %1716 = vrcp.f32 %v1287_v61 }
 0x685   : > { %v1296_v39 = vpop.permute.xlu0 %1295 }
 0x686   : > { %v1075_v62 = vpop.permute.xlu1 %1074 }
 0x687   : > { %1601 = vmatmul.mubr.msk.f32.vlgmr.msra.gmra.mrb[8].mxu1 %vm608_vm5, %v1075_v62 }
 0x68a   : > { %v406_v9 = vpop.permute.xlu1 %405 }
 0x68b   : > { %v491_v11 = vadd.f32 %v1936_v26, %v406_v9 }
 0x68c   : > { %v1715_v63 = vpop.eup %1714 }
 0x68d   : > { %v1717_v0 = vpop.eup %1716  ;;  %v1294_v2 = vmul.f32 %v1715_v63, %v1707_v50  ;;  %v1401_v19 = vmul.f32 %v1400_v13, %v491_v11 }
 0x68e   : > { %v1293_v3 = vmul.f32 %v1717_v0, %v1709_v51  ;;  %v1377_v10 = vpop.permute.xlu1 %1376 }
 0x68f   : > { %v1387_v15 = vsel %vm608_vm5, %v1977_v14, %v1377_v10 }
 0x690   : > { %v1628_v4 = vpack.c.bf16 %v1294_v2, %v1293_v3 }
 0x692   : > { %1630 = vmatpush3.bf16.xpose.msk.msra.mxu0 %vm1962_vm7, %v1628_v4 }
 0x699   : > { %1613 = vmatmul.mubr.msk.f32.vlgmr.msra.gmra.mrb[8].mxu0 %vm608_vm5, %v1296_v39 }
 0x75a   : > { %v1150_v5 = vpop.f32.mrb[8].mxu1 }
 0x75b   : > { %1380 = vrot.lane.b32.xlu0 %v1150_v5, %s1790_s15  ;;  %v1602_v6 = vpop.f32.mrb[9].mxu1  ;;  %s1724_s15 = scalar_lea.vmem %s1723_s14, 256 }
 0x75c   : > { %p1726_p1 = scmp.lt.s32.totalorder %s1724_s15, %s1718_s10 }
 0x75e   : > { %p1727_p2 = por %p1726_p1, %p1725_p0 }
 0x760   : > { %p1728_p3 = pnand %p1727_p2, %p1721_p13 }
 0x76c   : > { %v1371_v7 = vpop.f32.mrb[8].mxu0 }
 0x76d   : > { %1384 = vrot.lane.b32.xlu1 %v1371_v7, %s1791_s16  ;;  %v1614_v8 = vpop.f32.mrb[9].mxu0 }
 0x7cd   : > { %v1381_v1 = vpop.permute.xlu0 %1380 }
 0x7ce   : > { %v1389_v16 = vsel %vm1388_vm8, %v1387_v15, %v1381_v1 }
 0x7df   : > { %v1385_v17 = vpop.permute.xlu1 %1384 }
 0x7e0   : > { %v1391_v18 = vsel %vm1390_vm9, %v1389_v16, %v1385_v17 }
 0x7e1   : > { %v1399_v20 = vmul.f32 %v1398_v12, %v1391_v18 }
 0x7e3   : > { %v1402_v21 = vadd.f32 %v1401_v19, %v1399_v20 }
 0x7e5   : > { %1404 = vst.msk [vmem:[%s283_s22] sm:$0xff] %vm1403_vm10, %v1402_v21 }
 0x7e6   : > { %1731 = shalt.err (!%p1728_p3)
}
 0x7e7   : > { %s1732_s16 = scalar_lea.hbm %s2016_s30, 128  ;;  %s1736_s20 = scalar_lea.hbm %s2065_s7, 256 }
 0x7e8   : > { %p1733_p4 = scmp.ne.s32.totalorder %s2016_s30, %s1732_s16  ;;  %p1737_p9 = scmp.lt.u32.totalorder %s2016_s30, %s2065_s7 }
 0x7e9   : > { %p1738_p10 = scmp.lt.u32.totalorder %s1736_s20, %s1732_s16  ;;  %p1740_p12 = scmp.lt.u32.totalorder %s1732_s16, %s2016_s30 }
 0x7ea   : > { %p1734_p7 = pnand %p1733_p4, %p1874_p5 }
 0x7eb   : > { %p1739_p11 = por %p1738_p10, %p1737_p9 }
 0x7ec   : > { %p1735_p8 = pneg %p1734_p7 }
 0x7ed   : > { %p1741_p13 = por %p1740_p12, %p1739_p11 }
 0x7ef   : > { %p1742_p0 = pnand %p1741_p13, %p1735_p8 }
 0x7f1   : > { %1745 = shalt.err (!%p1742_p0)
}
 0x7f2   : > { %1633 = dma.vmem_to_hbm [thread:$0]  (%p1874_p5), %s2018_s23, 128, %s2016_s30, %s1406_s9  }
 0x7f3 PF: > { %p1639_p1 = scmp.ge.s32.totalorder %s1780_s29, 2  ;;  %s1431_s22 = sand.u32 1, %s1768_s26  }
 0x7f4   : > { %s1432_s24 = scalar_lea.sflag [#allocation4], %s1431_s22 }
 0x7f5   : > { %p1636_p2 = pnand %p1639_p1, %p1878_p6 }
 0x7f7   : > { %1763 = dma.done.wait (!%p1636_p2), %s1432_s24, 128  }
 0x7f8   : > { %1765 = vsyncadd (!%p1636_p2), %s1432_s24, 4294967168  ;;  %p18_p3 = scmp.ge.s32.totalorder %s1861_s8, 4   ;;  %s2070_s26 = smov %s1772_s27 }
 0x7f9   : > { %s2071_s27 = smov %s1776_s28  ;;  %s2072_s28 = smov %s1872_s11 }
 0x7fa   : > { %s2073_s29 = smov %s1861_s8  ;;  %20 = sbr.rel (!%p18_p3) target bundleno = 5 (0x5), region = 86 }
 0x801   :  { %1437 = vsyncpa [#allocation4], 1 }
 0x802   :  { %1439 = vsyncpa [#allocation4 + $0x1], 1 }

</bundles_post_ra>
